<compile_context>
chip_gen: v6e
topology: v6e:2x2x1
jax: 0.10.0
libtpu: 0.0.40
codegen_flags: <defaults>
</compile_context>

<pallas_src>
import math

import jax
import jax.numpy as jnp
from jax import lax
from jax.experimental import pallas as pl
from jax.experimental.pallas import tpu as pltpu


# --------------------------------------------------------------------------
# small helpers
# --------------------------------------------------------------------------
def _round_up(v, m):
    return (v + m - 1) // m * m


def _sublane(dtype):
    # native sublane tiling: 8 rows for 4-byte, 16 for 2-byte, 32 for 1-byte
    return max(8, 32 // jnp.dtype(dtype).itemsize)


def _vmem_limit_bytes():
    """Generation-aware scoped-VMEM budget (half of physical, capped at 64MiB).
    v5e/v6e: 128 MiB phys -> 64 MiB;  v7x: 64 MiB phys -> 32 MiB."""
    cap = None
    try:
        info = pltpu.get_tpu_info()
        cap = getattr(info, "vmem_capacity_bytes", None)
    except Exception:
        cap = None
    if not cap:
        cap = 64 * 1024 * 1024  # conservative fallback (v7x per-TensorCore)
    return max(16 * 1024 * 1024, min(int(cap) // 2, 64 * 1024 * 1024))


def _pick_tile_n(n, c, itemsize, sub, budget):
    """Row tile for the score kernel: big enough to amortize the ~0.35us
    per-step overhead, small enough that the double-buffered input tile fits
    the scoped budget AND the grid keeps >=~4 steps (pipelining + megacore)."""
    c_pad = _round_up(max(c, 1), 128)            # lanes are padded to 128
    t = (budget // 4) // (c_pad * itemsize)      # per input buffer (x2 buffered)
    t = max(sub, t // sub * sub)
    t = min(t, max(sub, _round_up(pl.cdiv(n, 4), sub)))   # keep >= ~4 steps
    t = min(t, _round_up(n, sub))
    return max(sub, t)


# --------------------------------------------------------------------------
# Pallas kernel 1: attention score   score = tanh(attn . w_hat)
# (w_hat = w / ||w||_2 pre-normalized outside; per-tile work is a VPU
#  multiply + cross-lane reduce + EUP tanh; HBM-bound in typical regimes.)
# --------------------------------------------------------------------------
def _score_kernel(x_ref, w_ref, s_ref):
    # cast once: v5e has no bf16 VPU/EUP path
    x = x_ref[...].astype(jnp.float32)
    w = w_ref[...].astype(jnp.float32)
    # TODO(synk): for very large C, jnp.dot onto the (otherwise idle) MXU would
    # avoid chaining the cross-lane reduce through the XLU; keep-in-pocket.
    s_ref[...] = jnp.tanh(jnp.sum(x * w, axis=-1, keepdims=True))


def compute_score(attn, w_hat, tile_n=None):
    N, C = attn.shape
    assert w_hat.shape == (1, C)
    itemsize = jnp.dtype(attn.dtype).itemsize
    sub = _sublane(attn.dtype)
    budget = _vmem_limit_bytes()
    if tile_n is None:
        tile_n = _pick_tile_n(N, C, itemsize, sub, budget)
    tile_n = max(sub, _round_up(min(int(tile_n), _round_up(N, sub)), sub))

    score = pl.pallas_call(
        _score_kernel,
        out_shape=jax.ShapeDtypeStruct((N, 1), jnp.float32),
        grid_spec=pltpu.PrefetchScalarGridSpec(
            num_scalar_prefetch=0,
            grid=(pl.cdiv(N, tile_n),),          # ragged tail block, no padding
            in_specs=[
                pl.BlockSpec((tile_n, C), lambda i: (i, 0)),
                pl.BlockSpec((1, C), lambda i: (0, 0)),
            ],
            # TODO(synk): (tile_n, 1) output -> masked vst; only worth a
            # lane-dense transpose if the store slot ever binds (v5e).
            out_specs=pl.BlockSpec((tile_n, 1), lambda i: (i, 0)),
        ),
        compiler_params=pltpu.CompilerParams(
            dimension_semantics=("parallel",),
            vmem_limit_bytes=budget,
        ),
    )(attn, w_hat)
    return score[:, 0]


# --------------------------------------------------------------------------
# Pallas kernel 2: batched row gather  x_out = multiplier * x[perm]
# TILE_K rows per grid step; manual double-buffered row DMAs from HBM.
# --------------------------------------------------------------------------
def gather_rows(x, perm, k, multiplier, tile_k=None):
    N, C = x.shape
    mult = float(multiplier)
    itemsize = jnp.dtype(x.dtype).itemsize
    sub = _sublane(x.dtype)
    budget = _vmem_limit_bytes()

    c_pad = _round_up(C, 128)
    # VMEM use ~= gather buf (2*TK rows) + double-buffered out blocks (2*TK rows)
    max_tk = max(sub, ((3 * budget // 4) // (4 * c_pad * itemsize)) // sub * sub)
    if tile_k is None:
        tile_k = 256                              # amortize step overhead; many DMAs in flight
    tile_k = max(sub, min(_round_up(int(tile_k), sub), max_tk, _round_up(k, sub)))
    n_steps = pl.cdiv(k, tile_k)

    def kernel(perm_ref, x_hbm, out_ref, buf, sems):
        step = pl.program_id(0)
        n = pl.num_programs(0)
        slot = step % 2

        def rows_in(s):                           # valid rows of grid step s
            return jnp.minimum(tile_k, k - s * tile_k)

        def issue(s, slot_idx):                   # start all row DMAs for step s
            src_base = s * tile_k
            dst_base = slot_idx * tile_k

            def body(i, carry):
                r = perm_ref[src_base + i]
                pltpu.make_async_copy(
                    x_hbm.at[pl.ds(r, 1), :],
                    buf.at[pl.ds(dst_base + i, 1), :],
                    sems.at[slot_idx],
                ).start()
                return carry

            lax.fori_loop(0, rows_in(s), body, 0)

        def wait(s, slot_idx):                    # one single-row wait per started copy
            def body(i, carry):
                pltpu.make_async_copy(
                    x_hbm.at[pl.ds(0, 1), :],
                    buf.at[pl.ds(0, 1), :],
                    sems.at[slot_idx],
                ).wait()
                return carry

            lax.fori_loop(0, rows_in(s), body, 0)

        # prologue: fill slot 0 for the very first step
        @pl.when(step == 0)
        def _():
            issue(0, 0)

        # prefetch next step's rows into the other slot (starts before any wait)
        @pl.when(step + 1 < n)
        def _():
            issue(step + 1, 1 - slot)

        wait(step, slot)

        off = pl.multiple_of(slot * tile_k, sub)
        vals = buf[pl.ds(off, tile_k), :]
        if mult != 1.0:                           # trace-time: skip mul when == 1
            vals = vals * jnp.asarray(mult, dtype=vals.dtype)
        out_ref[...] = vals                       # dense (TILE_K, C) block store

    return pl.pallas_call(
        kernel,
        out_shape=jax.ShapeDtypeStruct((k, C), x.dtype),
        grid_spec=pltpu.PrefetchScalarGridSpec(
            num_scalar_prefetch=1,                # perm -> SMEM
            grid=(n_steps,),
            in_specs=[pl.BlockSpec(memory_space=pl.ANY)],   # x stays in HBM
            out_specs=pl.BlockSpec((tile_k, C), lambda i, perm: (i, 0)),
            scratch_shapes=[
                pltpu.VMEM((2 * tile_k, C), x.dtype),       # double-buffered rows
                pltpu.SemaphoreType.DMA((2,)),              # one sem per slot
            ],
        ),
        compiler_params=pltpu.CompilerParams(
            # cross-step manual double-buffering carries state -> keep serial
            dimension_semantics=("arbitrary",),
            vmem_limit_bytes=budget,
        ),
    )(perm, x)


# --------------------------------------------------------------------------
# TopKPooling forward (single graph / batch == zeros, min_score=None)
# --------------------------------------------------------------------------
class TopKPoolingPallas:
    def __init__(self, in_channels, ratio=0.5, min_score=None, multiplier=1.0,
                 score_tile_n=None, gather_tile_k=None):
        assert min_score is None, "min_score path not implemented"
        self.in_channels = in_channels
        self.ratio = ratio
        self.min_score = min_score
        self.multiplier = multiplier
        self.score_tile_n = score_tile_n
        self.gather_tile_k = gather_tile_k
        # reset_parameters(): ones(self.weight) -> weight = ones(1, C)
        self.weight = jnp.ones((1, in_channels), dtype=jnp.float32)

    def __call__(self, x, edge_index, edge_attr=None, batch=None, attn=None):
        N = x.shape[0]
        if batch is None:
            batch = jnp.zeros((N,), dtype=jnp.int32)
        attn = x if attn is None else attn
        if attn.ndim == 1:
            attn = attn[:, None]

        # Hoist the weight normalization out of the tiled kernel:
        #   tanh((attn . w) / ||w||)  ==  tanh(attn . (w / ||w||))
        norm = jnp.sqrt(jnp.sum(self.weight * self.weight))
        norm = jnp.maximum(norm, 1e-12)            # guard ||w|| ~ 0 -> NaN
        w_hat = (self.weight / norm).astype(jnp.float32)
        if attn.shape[1] != w_hat.shape[1]:
            # PyTorch broadcasting (N,1)*(1,C) -> sum over C == scale by sum(w_hat)
            w_hat = jnp.sum(w_hat, axis=1, keepdims=True)

        # --- score (Pallas, tiled over N, no padding copy) ---
        score = compute_score(attn, w_hat, tile_n=self.score_tile_n)   # (N,)

        # --- top-k selection (plain JAX glue; sort has no clean Pallas path) --
        # TODO(synk): top-k is global; PyG applies `ratio` per graph in `batch`.
        # Only correct for a single graph (batch == zeros).
        r = float(self.ratio)
        if r >= 1.0 and r == int(r):               # integer ratio means k nodes
            k = min(int(r), N)
        else:
            k = int(math.ceil(r * N))
        k = max(k, 1)
        top_vals, perm = lax.top_k(score, k)       # descending
        perm = perm.astype(jnp.int32)

        # --- gather selected node features (Pallas, batched row-DMA gather) ---
        x_out = gather_rows(x, perm, k, self.multiplier,
                            tile_k=self.gather_tile_k)                 # (k, C)

        batch_out = batch[perm]

        # --- filter_adj: keep edges with both endpoints selected, remap ids --
        # TODO(synk): output edge count is data-dependent; done with boolean
        # masking on concrete arrays (outside jit), not in a Pallas kernel.
        node_mask = jnp.zeros((N,), dtype=bool).at[perm].set(True)
        new_idx = jnp.full((N,), -1, dtype=jnp.int32).at[perm].set(
            jnp.arange(k, dtype=jnp.int32)
        )
        row, col = edge_index[0], edge_index[1]
        emask = node_mask[row] & node_mask[col]
        row_f = row[emask]
        col_f = col[emask]
        edge_index_out = jnp.stack([new_idx[row_f], new_idx[col_f]])
        edge_attr_out = None if edge_attr is None else edge_attr[emask]

        return x_out, edge_index_out, edge_attr_out, batch_out, perm, top_vals


# --------------------------------------------------------------------------
# tests
# --------------------------------------------------------------------------
if __name__ == "__main__":
    key = jax.random.PRNGKey(0)
    kx, ke = jax.random.split(key)

    # --- case 1 & 2: tiny graph (N=20, C=32) ------------------------------
    N, C = 20, 32
    x = jax.random.normal(kx, (N, C), dtype=jnp.float32)
    src = jnp.arange(N, dtype=jnp.int32)
    dst = (src + 1) % N
    edge_index = jnp.concatenate(
        [jnp.stack([src, dst]), jnp.stack([dst, src])], axis=1)   # (2, 2N)

    w = jnp.ones((1, C), dtype=jnp.float32)
    score_ref = jnp.tanh(jnp.sum(x * w, axis=-1) / jnp.sqrt(jnp.sum(w * w)))

    # case 1: auto tiling, multiplier == 1 (pure DMA-copy gather path)
    pool1 = TopKPoolingPallas(in_channels=C, ratio=0.5, multiplier=1.0)
    x1, ei1, _, b1, perm1, s1 = pool1(x, edge_index)
    jax.block_until_ready(x1)
    k = x1.shape[0]
    ref_vals, _ = lax.top_k(score_ref, k)
    assert jnp.allclose(s1, ref_vals, atol=1e-5), "score(top-k) mismatch"
    assert jnp.allclose(s1, score_ref[perm1], atol=1e-5), "score[perm] mismatch"
    assert jnp.allclose(x1, x[perm1], atol=1e-5), "gather mismatch"
    assert x1.shape == (k, C) and ei1.shape[0] == 2 and b1.shape == (k,)

    # case 2: forced small tiles -> multi-step score grid AND multi-step
    # double-buffered gather (prologue + prefetch + ragged tail), multiplier=2
    pool2 = TopKPoolingPallas(in_channels=C, ratio=0.5, multiplier=2.0,
                              score_tile_n=8, gather_tile_k=8)
    x2, ei2, _, b2, perm2, s2 = pool2(x, edge_index)
    jax.block_until_ready(x2)
    assert jnp.allclose(s2, ref_vals, atol=1e-5), "tiled score mismatch"
    assert jnp.allclose(x2, 2.0 * x[perm2], atol=1e-5), "multiplier gather mismatch"
    assert ei2.shape[0] == 2

    # --- case 3: bigger graph -> several gather steps with default-ish tiles
    N3, C3 = 200, 64
    x3 = jax.random.normal(ke, (N3, C3), dtype=jnp.float32)
    src3 = jnp.arange(N3, dtype=jnp.int32)
    dst3 = (src3 + 1) % N3
    ei3_in = jnp.concatenate(
        [jnp.stack([src3, dst3]), jnp.stack([dst3, src3])], axis=1)
    w3 = jnp.ones((1, C3), dtype=jnp.float32)
    score_ref3 = jnp.tanh(jnp.sum(x3 * w3, axis=-1) / jnp.sqrt(jnp.sum(w3 * w3)))

    pool3 = TopKPoolingPallas(in_channels=C3, ratio=0.5, multiplier=1.0,
                              gather_tile_k=32)
    x3o, ei3, _, b3, perm3, s3 = pool3(x3, ei3_in)
    jax.block_until_ready(x3o)
    ref_vals3, _ = lax.top_k(score_ref3, x3o.shape[0])
    assert jnp.allclose(s3, ref_vals3, atol=1e-5), "case-3 score mismatch"
    assert jnp.allclose(x3o, x3[perm3], atol=1e-5), "case-3 gather mismatch"
    assert ei3.shape[0] == 2

    print("KERNEL_OK")
</pallas_src>

<mosaic_0001>
module attributes {stable_mosaic.version = 11 : i64} {
  func.func @_score_kernel(%arg0: i32, %arg1: memref<8x32xf32, #tpu.memory_space<vmem>>, %arg2: memref<1x32xf32, #tpu.memory_space<vmem>>, %arg3: memref<8x1xf32, #tpu.memory_space<vmem>>) attributes {dimension_semantics = [#tpu.dimension_semantics<parallel>], iteration_bounds = array<i64: 3>, scalar_prefetch = 0 : i64, scratch_operands = 0 : i64, tpu.core_type = #tpu.core_type<tc>, window_params = [{transform_indices = @transform_0, window_bounds = array<i64: 8, 32>}, {pipeline_mode = #tpu.pipeline_mode<synchronous>, transform_indices = @transform_1, window_bounds = array<i64: 1, 32>}, {transform_indices = @transform_2, window_bounds = array<i64: 8, 1>}]} {
    %c0 = arith.constant 0 : index
    %c0_0 = arith.constant 0 : index
    %0 = vector.load %arg1[%c0, %c0_0] : memref<8x32xf32, #tpu.memory_space<vmem>>, vector<8x32xf32>
    %c0_1 = arith.constant 0 : index
    %c0_2 = arith.constant 0 : index
    %1 = vector.load %arg2[%c0_1, %c0_2] : memref<1x32xf32, #tpu.memory_space<vmem>>, vector<1x32xf32>
    %2 = vector.broadcast %1 : vector<1x32xf32> to vector<8x32xf32>
    %3 = arith.mulf %0, %2 : vector<8x32xf32>
    %cst = arith.constant dense<0.000000e+00> : vector<8xf32>
    %4 = vector.multi_reduction <add>, %3, %cst [1] : vector<8x32xf32> to vector<8xf32>
    %5 = vector.shape_cast %4 : vector<8xf32> to vector<8x1xf32>
    %6 = math.tanh %5 : vector<8x1xf32>
    %c0_3 = arith.constant 0 : index
    %c0_4 = arith.constant 0 : index
    %7 = vector.load %arg3[%c0_3, %c0_4] : memref<8x1xf32, #tpu.memory_space<vmem>>, vector<8x1xf32>
    tpu.vector_store %arg3[%c0_3, %c0_4], %6 {strides = array<i32>} : memref<8x1xf32, #tpu.memory_space<vmem>>, vector<8x1xf32>,
    return
  }
  func.func @transform_0(%arg0: i32) -> (i32, i32) {
    %c0_i32 = arith.constant 0 : i32
    %c0_i32_0 = arith.constant 0 : i32
    return %arg0, %c0_i32 : i32, i32
  }
  func.func @transform_1(%arg0: i32) -> (i32, i32) {
    %c0_i32 = arith.constant 0 : i32
    %c0_i32_0 = arith.constant 0 : i32
    %c0_i32_1 = arith.constant 0 : i32
    return %c0_i32, %c0_i32_0 : i32, i32
  }
  func.func @transform_2(%arg0: i32) -> (i32, i32) {
    %c0_i32 = arith.constant 0 : i32
    %c0_i32_0 = arith.constant 0 : i32
    return %arg0, %c0_i32 : i32, i32
  }
}

</mosaic_0001>

<bundles_post_ra>
// kernel: tpu_custom_call.1
= control target key start
LH: loop header
LB: loop body
LE: loop exit
PB: predicated region body
PF: predicated region fallthrough
CT: control target
= control target key end

     0   :  { %7 = vsyncpa [#allocation3], 0  ;;  %s475_s0 = inlined_call_operand.hbm [shape: f32[20,32], index: 0, kind: input, shape index: {}]   ;;  %s476_s1 = inlined_call_operand.vmem [shape: f32[1,32], index: 1, kind: input, shape index: {}]   ;;  %s477_s2 = inlined_call_operand.vmem [shape: f32[20,1], index: 2, kind: output, shape index: {}]  }
   0x1   :  { %9 = vsyncpa [#allocation3 + $0x1], 0  ;;  %s372_s9 = smov 0   ;;  %s374_s10 = smov 0  }
   0x2   :  { %s376_s11 = smov 0   ;;  %s378_s12 = smov 0  }
   0x3 LB: > { %s391_s13 = sadd.s32 4294967295, %s354_s12   ;;  %s394_s14 = sadd.s32 1, %s354_s12   ;;  %s354_s12 = sphi %s378_s12, %s487_s12   ;;  %s350_s11 = sphi %s376_s11, %s486_s11   ;;  %s346_s10 = sphi %s374_s10, %s485_s10   ;;  %s342_s9 = sphi %s372_s9, %s484_s9  }
   0x4   : > { %s19_s15 = ssub.s32 %s354_s12, %s394_s14  ;;  %s22_s16 = sadd.s32 1, %s350_s11 }
   0x5   : > { %p20_p0 = scmp.eq.s32.totalorder %s19_s15, 0  ;;  %p29_p1 = scmp.ne.s32.totalorder %s350_s11, %s346_s10 }
   0x6   : > { %p30_p2 = scmp.eq.s32.totalorder %s354_s12, 0  ;;  %p35_p3 = scmp.ne.s32.totalorder %s346_s10, %s342_s9 }
   0x7   : > { %s404_s17 = scalar_select %p20_p0, %s350_s11, %s22_s16  }
   0x8   : > { %p31_p4 = por %p30_p2, %p29_p1  ;;  %p36_p5 = scmp.eq.s32.totalorder %s391_s13, 0 }
   0x9   : > { %p257_p6 = scmp.lt.s32.totalorder %s354_s12, 3  ;;  %s109_s19 = sand.u32 1, %s350_s11  }
   0xa   : > { %p408_p7 = por %p36_p5, %p35_p3  ;;  %s243_s20 = sshll.u32 %s109_s19, 3 }
   0xb   : > { %s244_s21 = sshll.u32 %s354_s12, 7  ;;  %s113_s25 = scalar_lea.vmem [#allocation2], %s243_s20 }
   0xc   : > { %s479_s18 = scalar_select %p408_p7, 1, 0 }
   0xd   : > { %s417_s24 = scalar_lea.hbm %s475_s0, %s244_s21  ;;  %s120_s26 = sshll.u32 %s113_s25, 4  ;;  %s419_s26 = int_to_ptr.vmem [resolvable:$true] %s120_s26 }
   0xe   : > { %p421_p8 = pnand %p257_p6, %p31_p4  ;;  %s110_s28 = scalar_lea.sflag [#allocation3], %s109_s19 }
   0xf   : > { %s292_s29 = scalar_lea.hbm %s417_s24, 128  ;;  %s297_s4 = scalar_lea.hbm %s475_s0, 384 }
  0x10   : > { %p293_p11 = scmp.ne.s32.totalorder %s417_s24, %s292_s29  ;;  %p294_p12 = pneg %p421_p8 }
  0x11   : > { %p298_p1 = scmp.lt.s32.totalorder %s417_s24, %s475_s0  ;;  %p299_p2 = scmp.lt.s32.totalorder %s297_s4, %s292_s29 }
  0x12   : > { %p295_p13 = pnand %p294_p12, %p293_p11 }
  0x13   : > { %p300_p3 = por %p299_p2, %p298_p1 }
  0x14   : > { %p296_p0 = pneg %p295_p13 }
  0x16   : > { %p301_p4 = pnand %p300_p3, %p296_p0 }
  0x18   : > { %304 = shalt.err (!%p301_p4)
}
  0x19   : > { %s305_s7 = scalar_lea.vmem %s419_s26, 128  ;;  %s356_s8 = smov [#allocation2]  }
  0x1a   : > { %p306_p5 = scmp.ne.s32.totalorder %s419_s26, %s305_s7  ;;  %s310_s9 = sshll.u32 %s356_s8, 4  ;;  %s311_s9 = int_to_ptr.vmem [resolvable:$false] %s310_s9 }
  0x1b   : > { %s312_s15 = scalar_lea.vmem %s311_s9, 256  ;;  %p313_p13 = scmp.lt.s32.totalorder %s419_s26, %s311_s9 }
  0x1c   : > { %p308_p6 = pnand %p306_p5, %p294_p12  ;;  %p314_p9 = scmp.lt.s32.totalorder %s312_s15, %s305_s7 }
  0x1e   : > { %p309_p11 = pneg %p308_p6  ;;  %p315_p10 = por %p314_p9, %p313_p13 }
  0x20   : > { %p316_p7 = pnand %p315_p10, %p309_p11 }
  0x22   : > { %319 = shalt.err (!%p316_p7)
}
  0x23   : > { %256 = dma.hbm_to_vmem [thread:$0]  (!%p421_p8), %s417_s24, 128, %s419_s26, %s110_s28  }
  0x24   : > { %p481_p0 = scmp.lt.s32.totalorder %s354_s12, 4  ;;  %p482_p1 = scmp.ge.s32.totalorder %s354_s12, 1 }
  0x26   : > { %p126_p12 = pnand %p482_p1, %p481_p0 }
  0x27   : > { %s131_s16 = sand.u32 (!%p126_p12), 1, %s346_s10   ;;  %p483_p9 = scmp.ne.s32.totalorder (!%p126_p12), %s479_s18, 0 }
  0x28   : > { %129 = sbr.rel (%p126_p12) target bundleno = 204 (0xcc), region = 28  ;;  %s246_s19 = sshll.u32 (!%p126_p12), %s131_s16, 3 }
  0x29   : > { %s132_s20 = scalar_lea.sflag (!%p126_p12), [#allocation3], %s131_s16  ;;  %s135_s21 = scalar_lea.vmem (!%p126_p12), [#allocation2], %s246_s19 }
  0x2d   : > { %337 = dma.done.wait (%p483_p9), %s132_s20, 128  }
  0x2e   : > { %339 = vsyncadd (%p483_p9), %s132_s20, 4294967168  ;;  %v159_v0 = vld [vmem:[%s135_s21] sm:$0xff]  ;;  %vm168_vm0 = vcmask 261120   ;;  %p155_p7 = scmp.lt.s32.totalorder %s391_s13, 2  ;;  %vm173_vm1 = vcmask 7168  }
  0x2f   : > { %v248_v1 = vld [vmem:[%s476_s1] ss:$0 sm:$0xff] }
  0x30   : > { %v167_v2 = vmul.f32 %v248_v1, %v159_v0  ;;  %s489_s13 = smov (!%p155_p7, %s391_s13), 2 }
  0x31   : > { %s247_s12 = sshll.u32 %s489_s13, 3 }
  0x32   : > { %v169_v3 = vsel %vm168_vm0, %v167_v2, 0.0  ;;  %s158_s18 = scalar_lea.vmem %s477_s2, %s247_s12 }
  0x33   : > { %170 = vadd.xlane.f32.xlu0 %v169_v3 }
  0xbc   : > { %v171_v4 = vpop.xlane.xlu0 %170 }
  0xbd   : > { %290 = vtanh.f32 %v171_v4 }
  0xca   : > { %v291_v5 = vpop.eup %290 }
  0xcb   : > { %174 = vst.msk [vmem:[%s158_s18] sm:$0xff] %vm173_vm1, %v291_v5 }
  0xcc PF: > { %p12_p8 = scmp.ge.s32.totalorder %s394_s14, 5   ;;  %s484_s9 = smov %s346_s10 }
  0xcd   : > { %s485_s10 = smov %s350_s11  ;;  %s486_s11 = smov %s404_s17 }
  0xce   : > { %s487_s12 = smov %s394_s14  ;;  %14 = sbr.rel (!%p12_p8) target bundleno = 3 (0x3), region = 68 }
  0xd3   :  { %194 = vsyncpa [#allocation3], 1 }
  0xd4   :  { %196 = vsyncpa [#allocation3 + $0x1], 1 }

</bundles_post_ra>
